<compile_context>
chip_gen: v6e
topology: v6e:2x2x1
jax: 0.10.0
libtpu: 0.0.40
codegen_flags: <defaults>
</compile_context>

<pallas_src>
import functools

import jax
import jax.numpy as jnp
from jax.experimental import pallas as pl
from jax.experimental.pallas import tpu as pltpu

LANE = 128  # pad every feature dim to one full vreg lane width


# ------------------------------ kernel ------------------------------------- #

def _apply_act(y, act):
    if act == "relu":
        return jnp.maximum(y, 0.0)
    if act == "leaky_relu":
        return jnp.where(y > 0, y, 0.01 * y)
    return y


def fused_sage_kernel(x_ref, adj_ref, w1_ref, b1_ref, cw_ref, cb_ref,
                      w2_ref, b2_ref, o_ref, *, act, n_convs, num_class):
    adj = adj_ref[...]                                   # (N, N), row-normalized

    # linear_1 + activation   (dropout p=0.5 is identity in eval mode)
    # TODO(synk): training-mode stochastic dropout (pltpu.prng_*) not implemented.
    h = jnp.dot(x_ref[...], w1_ref[...], preferred_element_type=jnp.float32)
    h = _apply_act(h + b1_ref[...], act)                 # (N, 128)

    # SAGEConv stack: out = lin_l(mean_aggr) + lin_r(x), bias on lin_l.
    # Both projections fused into a single (N, 256) @ (256, 128) matmul.
    for i in range(n_convs):                             # static unroll
        aggr = jnp.dot(adj, h, preferred_element_type=jnp.float32)
        hcat = jnp.concatenate([aggr, h], axis=-1)       # (N, 256), lane-aligned
        y = jnp.dot(hcat, cw_ref[i], preferred_element_type=jnp.float32)
        y = y + cb_ref[i]
        h = _apply_act(y, act) if i != n_convs - 1 else y

    # linear_2 (second dropout is identity in eval mode)
    logits = jnp.dot(h, w2_ref[...], preferred_element_type=jnp.float32)
    logits = logits + b2_ref[...]                        # (N, 128)

    # log_softmax over the real (un-padded) class lanes only
    col = jax.lax.broadcasted_iota(jnp.int32, logits.shape, 1)
    valid = col < num_class
    masked = jnp.where(valid, logits, jnp.float32(-1e30))
    m = jnp.max(masked, axis=-1, keepdims=True)
    s = masked - m
    e = jnp.where(valid, jnp.exp(s), 0.0)
    lse = jnp.log(jnp.sum(e, axis=-1, keepdims=True))
    o_ref[...] = jnp.where(valid, s - lse, 0.0).astype(o_ref.dtype)


# ------------------------------ wrapper ------------------------------------ #

@functools.partial(jax.jit, static_argnames=("act", "num_class"))
def model_forward(packed, x_pad, adj, act="relu", num_class=8):
    N = x_pad.shape[0]
    n_convs = packed["cw"].shape[0]
    out_pad = pl.pallas_call(
        functools.partial(fused_sage_kernel, act=act,
                          n_convs=n_convs, num_class=num_class),
        out_shape=jax.ShapeDtypeStruct((N, LANE), jnp.float32),
        grid=(1,),
        in_specs=[
            pl.BlockSpec((N, LANE), lambda i: (0, 0)),                      # x (padded)
            pl.BlockSpec((N, N), lambda i: (0, 0)),                         # adj
            pl.BlockSpec((LANE, LANE), lambda i: (0, 0)),                   # w1
            pl.BlockSpec((1, LANE), lambda i: (0, 0)),                      # b1
            pl.BlockSpec((n_convs, 2 * LANE, LANE), lambda i: (0, 0, 0)),   # conv W_cat
            pl.BlockSpec((n_convs, 1, LANE), lambda i: (0, 0, 0)),          # conv bias
            pl.BlockSpec((LANE, LANE), lambda i: (0, 0)),                   # w2
            pl.BlockSpec((1, LANE), lambda i: (0, 0)),                      # b2
        ],
        out_specs=pl.BlockSpec((N, LANE), lambda i: (0, 0)),
        compiler_params=pltpu.CompilerParams(
            dimension_semantics=("arbitrary",)),
    )(x_pad, adj, packed["w1"], packed["b1"], packed["cw"], packed["cb"],
      packed["w2"], packed["b2"])
    return out_pad[:, :num_class]


# --------------------------- glue (plain JAX) ------------------------------ #

def build_norm_adj(edge_index, edge_weight, num_nodes):
    """Dense row-normalized adjacency: A[dst, src] = w / sum_w(dst)."""
    src, dst = edge_index[0], edge_index[1]
    adj = jnp.zeros((num_nodes, num_nodes), jnp.float32)
    adj = adj.at[dst, src].add(edge_weight.astype(jnp.float32))
    deg = jnp.sum(adj, axis=1, keepdims=True)
    return jnp.where(deg > 0, adj / jnp.maximum(deg, 1e-12), 0.0)


def _uniform(key, shape, fan_in):
    bound = 1.0 / jnp.sqrt(jnp.float32(fan_in))
    return jax.random.uniform(key, shape, jnp.float32, -bound, bound)


def init_params(key, num_features, hidden_list, num_class):
    keys = jax.random.split(key, 4 + 3 * (len(hidden_list) - 1))
    params = {
        "w1": _uniform(keys[0], (num_features, hidden_list[0]), num_features),
        "b1": _uniform(keys[1], (hidden_list[0],), num_features),
        "w2": _uniform(keys[2], (hidden_list[-1], num_class), hidden_list[-1]),
        "b2": _uniform(keys[3], (num_class,), hidden_list[-1]),
        "convs": [],
    }
    k = 4
    for i in range(len(hidden_list) - 1):
        fi, fo = hidden_list[i], hidden_list[i + 1]
        params["convs"].append({
            "wl": _uniform(keys[k + 0], (fi, fo), fi),   # lin_l (aggregated)
            "wr": _uniform(keys[k + 1], (fi, fo), fi),   # lin_r (root)
            "b": _uniform(keys[k + 2], (fo,), fi),
        })
        k += 3
    return params


def _pad_to(a, shape):
    pads = [(0, t - s) for s, t in zip(a.shape, shape)]
    return jnp.pad(a, pads)


def pack_params(params):
    """Pad all feature dims to 128 lanes and concat each conv's (W_l, W_r).

    Padded weight rows/cols are zero, so padded lanes stay exactly 0 through
    the whole network and slicing the real columns at the end is exact.
    Done ONCE, not per forward.
    """
    P = LANE
    cws, cbs = [], []
    for c in params["convs"]:
        wl = _pad_to(c["wl"], (P, P))
        wr = _pad_to(c["wr"], (P, P))
        cws.append(jnp.concatenate([wl, wr], axis=0))          # (2P, P)
        cbs.append(_pad_to(c["b"].reshape(1, -1), (1, P)))     # (1, P)
    return {
        "w1": _pad_to(params["w1"], (P, P)),
        "b1": _pad_to(params["b1"].reshape(1, -1), (1, P)),
        "w2": _pad_to(params["w2"], (P, P)),
        "b2": _pad_to(params["b2"].reshape(1, -1), (1, P)),
        "cw": jnp.stack(cws),                                  # (L, 2P, P)
        "cb": jnp.stack(cbs),                                  # (L, 1, P)
    }


def reference_forward(params, x, adj, act="relu"):
    """Pure-JAX reference (unpadded) for correctness checking."""
    def a(v):
        if act == "relu":
            return jnp.maximum(v, 0.0)
        return jnp.where(v > 0, v, 0.01 * v)
    h = a(x @ params["w1"] + params["b1"])
    n = len(params["convs"])
    for i, c in enumerate(params["convs"]):
        y = (adj @ h) @ c["wl"] + h @ c["wr"] + c["b"]
        h = a(y) if i != n - 1 else y
    logits = h @ params["w2"] + params["b2"]
    return jax.nn.log_softmax(logits, axis=-1)


# ------------------------------- main -------------------------------------- #

if __name__ == "__main__":
    key = jax.random.PRNGKey(0)
    k_x, k_ei, k_ew, k_p = jax.random.split(key, 4)

    num_nodes = 64
    num_features = 16
    num_layers = 2
    hidden_list = [32, 32, 16]          # len == num_layers + 1
    num_class = 8
    num_edges = 256

    x = jax.random.normal(k_x, (num_nodes, num_features), jnp.float32)
    edge_index = jax.random.randint(k_ei, (2, num_edges), 0, num_nodes)
    edge_weight = jax.random.uniform(k_ew, (num_edges,), jnp.float32, 0.1, 1.0)

    # Hoisted out of the per-forward path: adjacency and padded/packed params.
    adj = build_norm_adj(edge_index, edge_weight, num_nodes)
    params = init_params(k_p, num_features, hidden_list, num_class)
    packed = pack_params(params)
    x_pad = _pad_to(x, (num_nodes, LANE))

    out = model_forward(packed, x_pad, adj, act="relu", num_class=num_class)
    out = jax.block_until_ready(out)

    assert out.shape == (num_nodes, num_class)
    # rows of log_softmax should sum (in prob space) to ~1
    assert jnp.allclose(jnp.sum(jnp.exp(out), axis=-1), 1.0, atol=1e-4)
    # match the pure-JAX reference forward
    ref = reference_forward(params, x, adj, act="relu")
    assert jnp.allclose(out, ref, atol=1e-4, rtol=1e-4)
    print("KERNEL_OK")
</pallas_src>

<mosaic_0001>
module attributes {stable_mosaic.version = 11 : i64} {
  func.func @fused_sage_kernel(%arg0: i32, %arg1: memref<64x128xf32, #tpu.memory_space<vmem>>, %arg2: memref<64x64xf32, #tpu.memory_space<vmem>>, %arg3: memref<128x128xf32, #tpu.memory_space<vmem>>, %arg4: memref<1x128xf32, #tpu.memory_space<vmem>>, %arg5: memref<2x256x128xf32, #tpu.memory_space<vmem>>, %arg6: memref<2x1x128xf32, #tpu.memory_space<vmem>>, %arg7: memref<128x128xf32, #tpu.memory_space<vmem>>, %arg8: memref<1x128xf32, #tpu.memory_space<vmem>>, %arg9: memref<64x128xf32, #tpu.memory_space<vmem>>) attributes {dimension_semantics = [#tpu.dimension_semantics<arbitrary>], iteration_bounds = array<i64: 1>, scalar_prefetch = 0 : i64, scratch_operands = 0 : i64, tpu.core_type = #tpu.core_type<tc>, window_params = [{pipeline_mode = #tpu.pipeline_mode<synchronous>, transform_indices = @transform_0, window_bounds = array<i64: 64, 128>}, {pipeline_mode = #tpu.pipeline_mode<synchronous>, transform_indices = @transform_1, window_bounds = array<i64: 64, 64>}, {pipeline_mode = #tpu.pipeline_mode<synchronous>, transform_indices = @transform_2, window_bounds = array<i64: 128, 128>}, {pipeline_mode = #tpu.pipeline_mode<synchronous>, transform_indices = @transform_3, window_bounds = array<i64: 1, 128>}, {pipeline_mode = #tpu.pipeline_mode<synchronous>, transform_indices = @transform_4, window_bounds = array<i64: 2, 256, 128>}, {pipeline_mode = #tpu.pipeline_mode<synchronous>, transform_indices = @transform_5, window_bounds = array<i64: 2, 1, 128>}, {pipeline_mode = #tpu.pipeline_mode<synchronous>, transform_indices = @transform_6, window_bounds = array<i64: 128, 128>}, {pipeline_mode = #tpu.pipeline_mode<synchronous>, transform_indices = @transform_7, window_bounds = array<i64: 1, 128>}, {pipeline_mode = #tpu.pipeline_mode<synchronous>, transform_indices = @transform_8, window_bounds = array<i64: 64, 128>}]} {
    %c0 = arith.constant 0 : index
    %c0_0 = arith.constant 0 : index
    %0 = vector.load %arg2[%c0, %c0_0] : memref<64x64xf32, #tpu.memory_space<vmem>>, vector<64x64xf32>
    %c0_1 = arith.constant 0 : index
    %c0_2 = arith.constant 0 : index
    %1 = vector.load %arg1[%c0_1, %c0_2] : memref<64x128xf32, #tpu.memory_space<vmem>>, vector<64x128xf32>
    %c0_3 = arith.constant 0 : index
    %c0_4 = arith.constant 0 : index
    %2 = vector.load %arg3[%c0_3, %c0_4] : memref<128x128xf32, #tpu.memory_space<vmem>>, vector<128x128xf32>
    %cst = arith.constant dense<0.000000e+00> : vector<64x128xf32>
    %3 = tpu.matmul %1, %2, %cst {dimension_numbers = #tpu.dot_dimension_numbers<[1], [0], [0], [1], [0, 0, 1, 1], [], []>} : vector<64x128xf32>, vector<128x128xf32>, vector<64x128xf32> -> vector<64x128xf32>
    %c0_5 = arith.constant 0 : index
    %c0_6 = arith.constant 0 : index
    %4 = vector.load %arg4[%c0_5, %c0_6] : memref<1x128xf32, #tpu.memory_space<vmem>>, vector<1x128xf32>
    %5 = vector.broadcast %4 : vector<1x128xf32> to vector<64x128xf32>
    %6 = arith.addf %3, %5 : vector<64x128xf32>
    %cst_7 = arith.constant 0.000000e+00 : f32
    %7 = vector.broadcast %cst_7 : f32 to vector<64x128xf32>
    %8 = arith.maximumf %6, %7 : vector<64x128xf32>
    %cst_8 = arith.constant dense<0.000000e+00> : vector<64x128xf32>
    %9 = tpu.matmul %0, %8, %cst_8 {dimension_numbers = #tpu.dot_dimension_numbers<[1], [0], [0], [1], [0, 0, 1, 1], [], []>} : vector<64x64xf32>, vector<64x128xf32>, vector<64x128xf32> -> vector<64x128xf32>
    %10 = tpu.concatenate %9, %8 in 1 : vector<64x128xf32>, vector<64x128xf32> -> vector<64x256xf32>
    %c0_9 = arith.constant 0 : index
    %c0_10 = arith.constant 0 : index
    %c0_11 = arith.constant 0 : index
    %11 = vector.load %arg5[%c0_9, %c0_10, %c0_11] : memref<2x256x128xf32, #tpu.memory_space<vmem>>, vector<1x256x128xf32>
    %12 = vector.shape_cast %11 : vector<1x256x128xf32> to vector<256x128xf32>
    %cst_12 = arith.constant dense<0.000000e+00> : vector<64x128xf32>
    %13 = tpu.matmul %10, %12, %cst_12 {dimension_numbers = #tpu.dot_dimension_numbers<[1], [0], [0], [1], [0, 0, 1, 1], [], []>} : vector<64x256xf32>, vector<256x128xf32>, vector<64x128xf32> -> vector<64x128xf32>
    %c0_13 = arith.constant 0 : index
    %c0_14 = arith.constant 0 : index
    %c0_15 = arith.constant 0 : index
    %14 = vector.load %arg6[%c0_13, %c0_14, %c0_15] : memref<2x1x128xf32, #tpu.memory_space<vmem>>, vector<1x1x128xf32>
    %15 = vector.shape_cast %14 : vector<1x1x128xf32> to vector<1x128xf32>
    %16 = vector.broadcast %15 : vector<1x128xf32> to vector<64x128xf32>
    %17 = arith.addf %13, %16 : vector<64x128xf32>
    %cst_16 = arith.constant 0.000000e+00 : f32
    %18 = vector.broadcast %cst_16 : f32 to vector<64x128xf32>
    %19 = arith.maximumf %17, %18 : vector<64x128xf32>
    %cst_17 = arith.constant dense<0.000000e+00> : vector<64x128xf32>
    %20 = tpu.matmul %0, %19, %cst_17 {dimension_numbers = #tpu.dot_dimension_numbers<[1], [0], [0], [1], [0, 0, 1, 1], [], []>} : vector<64x64xf32>, vector<64x128xf32>, vector<64x128xf32> -> vector<64x128xf32>
    %21 = tpu.concatenate %20, %19 in 1 : vector<64x128xf32>, vector<64x128xf32> -> vector<64x256xf32>
    %c1 = arith.constant 1 : index
    %c0_18 = arith.constant 0 : index
    %c0_19 = arith.constant 0 : index
    %22 = vector.load %arg5[%c1, %c0_18, %c0_19] : memref<2x256x128xf32, #tpu.memory_space<vmem>>, vector<1x256x128xf32>
    %23 = vector.shape_cast %22 : vector<1x256x128xf32> to vector<256x128xf32>
    %cst_20 = arith.constant dense<0.000000e+00> : vector<64x128xf32>
    %24 = tpu.matmul %21, %23, %cst_20 {dimension_numbers = #tpu.dot_dimension_numbers<[1], [0], [0], [1], [0, 0, 1, 1], [], []>} : vector<64x256xf32>, vector<256x128xf32>, vector<64x128xf32> -> vector<64x128xf32>
    %c1_21 = arith.constant 1 : index
    %c0_22 = arith.constant 0 : index
    %c0_23 = arith.constant 0 : index
    %25 = vector.load %arg6[%c1_21, %c0_22, %c0_23] : memref<2x1x128xf32, #tpu.memory_space<vmem>>, vector<1x1x128xf32>
    %26 = vector.shape_cast %25 : vector<1x1x128xf32> to vector<1x128xf32>
    %27 = vector.broadcast %26 : vector<1x128xf32> to vector<64x128xf32>
    %28 = arith.addf %24, %27 : vector<64x128xf32>
    %c0_24 = arith.constant 0 : index
    %c0_25 = arith.constant 0 : index
    %29 = vector.load %arg7[%c0_24, %c0_25] : memref<128x128xf32, #tpu.memory_space<vmem>>, vector<128x128xf32>
    %cst_26 = arith.constant dense<0.000000e+00> : vector<64x128xf32>
    %30 = tpu.matmul %28, %29, %cst_26 {dimension_numbers = #tpu.dot_dimension_numbers<[1], [0], [0], [1], [0, 0, 1, 1], [], []>} : vector<64x128xf32>, vector<128x128xf32>, vector<64x128xf32> -> vector<64x128xf32>
    %c0_27 = arith.constant 0 : index
    %c0_28 = arith.constant 0 : index
    %31 = vector.load %arg8[%c0_27, %c0_28] : memref<1x128xf32, #tpu.memory_space<vmem>>, vector<1x128xf32>
    %32 = vector.broadcast %31 : vector<1x128xf32> to vector<64x128xf32>
    %33 = arith.addf %30, %32 : vector<64x128xf32>
    %34 = tpu.iota {dimensions = array<i32: 1>} : vector<64x128xi32>
    %c8_i32 = arith.constant 8 : i32
    %35 = vector.broadcast %c8_i32 : i32 to vector<64x128xi32>
    %36 = arith.cmpi slt, %34, %35 : vector<64x128xi32>
    %cst_29 = arith.constant -1.000000e+30 : f32
    %37 = vector.broadcast %cst_29 : f32 to vector<64x128xf32>
    %38 = arith.select %36, %33, %37 : vector<64x128xi1>, vector<64x128xf32>
    %cst_30 = arith.constant dense<0xFF800000> : vector<64xf32>
    %39 = vector.multi_reduction <maximumf>, %38, %cst_30 [1] : vector<64x128xf32> to vector<64xf32>
    %40 = vector.shape_cast %39 : vector<64xf32> to vector<64x1xf32>
    %41 = vector.broadcast %40 : vector<64x1xf32> to vector<64x128xf32>
    %42 = arith.subf %38, %41 : vector<64x128xf32>
    %43 = math.exp %42 : vector<64x128xf32>
    %cst_31 = arith.constant 0.000000e+00 : f32
    %44 = vector.broadcast %cst_31 : f32 to vector<64x128xf32>
    %45 = arith.select %36, %43, %44 : vector<64x128xi1>, vector<64x128xf32>
    %cst_32 = arith.constant dense<0.000000e+00> : vector<64xf32>
    %46 = vector.multi_reduction <add>, %45, %cst_32 [1] : vector<64x128xf32> to vector<64xf32>
    %47 = vector.shape_cast %46 : vector<64xf32> to vector<64x1xf32>
    %48 = math.log %47 : vector<64x1xf32>
    %49 = vector.broadcast %48 : vector<64x1xf32> to vector<64x128xf32>
    %50 = arith.subf %42, %49 : vector<64x128xf32>
    %cst_33 = arith.constant 0.000000e+00 : f32
    %51 = vector.broadcast %cst_33 : f32 to vector<64x128xf32>
    %52 = arith.select %36, %50, %51 : vector<64x128xi1>, vector<64x128xf32>
    %c0_34 = arith.constant 0 : index
    %c0_35 = arith.constant 0 : index
    %53 = vector.load %arg9[%c0_34, %c0_35] : memref<64x128xf32, #tpu.memory_space<vmem>>, vector<64x128xf32>
    tpu.vector_store %arg9[%c0_34, %c0_35], %52 {strides = array<i32>} : memref<64x128xf32, #tpu.memory_space<vmem>>, vector<64x128xf32>,
    return
  }
  func.func @transform_0(%arg0: i32) -> (i32, i32) {
    %c0_i32 = arith.constant 0 : i32
    %c0_i32_0 = arith.constant 0 : i32
    %c0_i32_1 = arith.constant 0 : i32
    return %c0_i32, %c0_i32_0 : i32, i32
  }
  func.func @transform_1(%arg0: i32) -> (i32, i32) {
    %c0_i32 = arith.constant 0 : i32
    %c0_i32_0 = arith.constant 0 : i32
    %c0_i32_1 = arith.constant 0 : i32
    return %c0_i32, %c0_i32_0 : i32, i32
  }
  func.func @transform_2(%arg0: i32) -> (i32, i32) {
    %c0_i32 = arith.constant 0 : i32
    %c0_i32_0 = arith.constant 0 : i32
    %c0_i32_1 = arith.constant 0 : i32
    return %c0_i32, %c0_i32_0 : i32, i32
  }
  func.func @transform_3(%arg0: i32) -> (i32, i32) {
    %c0_i32 = arith.constant 0 : i32
    %c0_i32_0 = arith.constant 0 : i32
    %c0_i32_1 = arith.constant 0 : i32
    return %c0_i32, %c0_i32_0 : i32, i32
  }
  func.func @transform_4(%arg0: i32) -> (i32, i32, i32) {
    %c0_i32 = arith.constant 0 : i32
    %c0_i32_0 = arith.constant 0 : i32
    %c0_i32_1 = arith.constant 0 : i32
    %c0_i32_2 = arith.constant 0 : i32
    return %c0_i32, %c0_i32_0, %c0_i32_1 : i32, i32, i32
  }
  func.func @transform_5(%arg0: i32) -> (i32, i32, i32) {
    %c0_i32 = arith.constant 0 : i32
    %c0_i32_0 = arith.constant 0 : i32
    %c0_i32_1 = arith.constant 0 : i32
    %c0_i32_2 = arith.constant 0 : i32
    return %c0_i32, %c0_i32_0, %c0_i32_1 : i32, i32, i32
  }
  func.func @transform_6(%arg0: i32) -> (i32, i32) {
    %c0_i32 = arith.constant 0 : i32
    %c0_i32_0 = arith.constant 0 : i32
    %c0_i32_1 = arith.constant 0 : i32
    return %c0_i32, %c0_i32_0 : i32, i32
  }
  func.func @transform_7(%arg0: i32) -> (i32, i32) {
    %c0_i32 = arith.constant 0 : i32
    %c0_i32_0 = arith.constant 0 : i32
    %c0_i32_1 = arith.constant 0 : i32
    return %c0_i32, %c0_i32_0 : i32, i32
  }
  func.func @transform_8(%arg0: i32) -> (i32, i32) {
    %c0_i32 = arith.constant 0 : i32
    %c0_i32_0 = arith.constant 0 : i32
    %c0_i32_1 = arith.constant 0 : i32
    return %c0_i32, %c0_i32_0 : i32, i32
  }
}

</mosaic_0001>

<bundles_post_ra>
// kernel: model_forward.1
= control target key start
LH: loop header
LB: loop body
LE: loop exit
PB: predicated region body
PF: predicated region fallthrough
CT: control target
= control target key end

     0   :  { %13 = vsyncpa [#allocation3], 0  ;;  %s1886_s0 = inlined_call_operand.hbm [shape: f32[64,128], index: 0, kind: input, shape index: {}]   ;;  %s1887_s1 = inlined_call_operand.hbm [shape: f32[64,64], index: 1, kind: input, shape index: {}]   ;;  %s1888_s2 = inlined_call_operand.hbm [shape: f32[128,128], index: 2, kind: input, shape index: {}]   ;;  %s1889_s3 = inlined_call_operand.hbm [shape: f32[1,128], index: 3, kind: input, shape index: {}]   ;;  %s1890_s4 = inlined_call_operand.hbm [shape: f32[2,256,128], index: 4, kind: input, shape index: {}]   ;;  %s1891_s5 = inlined_call_operand.vmem [shape: f32[2,1,128], index: 5, kind: input, shape index: {}]   ;;  %s1892_s6 = inlined_call_operand.hbm [shape: f32[128,128], index: 6, kind: input, shape index: {}]   ;;  %s1893_s7 = inlined_call_operand.vmem [shape: f32[1,128], index: 7, kind: input, shape index: {}]   ;;  %s1894_s8 = inlined_call_operand.vmem [shape: f32[64,128], index: 8, kind: output, shape index: {}]  }
   0x1   :  { %14 = vsyncpa [#allocation5], 0 }
   0x2   :  { %15 = vsyncpa [#allocation8], 0 }
   0x3   :  { %16 = vsyncpa [#allocation11], 0  ;;  %s1570_s27 = smov [#allocation4]   ;;  %s1571_s29 = smov [#allocation7]  }
   0x4   :  { %s34_s28 = sshll.u32 %s1570_s27, 4  ;;  %s59_s30 = sshll.u32 %s1571_s29, 4  ;;  %s35_s28 = int_to_ptr.vmem [resolvable:$true] %s34_s28  ;;  %s60_s30 = int_to_ptr.vmem [resolvable:$true] %s59_s30 }
   0x5   :  { %s1450_s9 = scalar_lea.vmem %s35_s28, 1024  ;;  %p1455_p1 = scmp.lt.s32.totalorder %s35_s28, %s35_s28 }
   0x6   :  { %p1451_p0 = scmp.ne.s32.totalorder %s35_s28, %s1450_s9  ;;  %p1456_p2 = scmp.lt.s32.totalorder %s1450_s9, %s1450_s9 }
   0x8   :  { %p1457_p3 = por %p1456_p2, %p1455_p1 }
   0xa   :  { %p1458_p4 = pnand %p1457_p3, %p1451_p0 }
   0xc   :  { %1461 = shalt.err (!%p1458_p4)
}
   0xd   :  { %s1572_s10 = smov 128   ;;  %s1573_s11 = smov 8  }
   0xe   :  { %40 = dma.hbm_to_vmem [thread:$0]  %s1887_s1, 1024, %s35_s28, [#allocation5], %s1572_s10, %s1572_s10, %s1573_s11  }
   0xf   :  { %s1470_s14 = scalar_lea.vmem %s60_s30, 16  ;;  %s1474_s15 = scalar_lea.vmem %s60_s30, 32 }
  0x10   :  { %p1471_p5 = scmp.ne.s32.totalorder %s60_s30, %s1470_s14  ;;  %p1475_p6 = scmp.lt.s32.totalorder %s60_s30, %s60_s30 }
  0x11   :  { %p1476_p7 = scmp.lt.s32.totalorder %s1474_s15, %s1470_s14 }
  0x13   :  { %p1477_p8 = por %p1476_p7, %p1475_p6 }
  0x15   :  { %p1478_p9 = pnand %p1477_p8, %p1471_p5 }
  0x17   :  { %1481 = shalt.err (!%p1478_p9)
}
  0x18   :  { %62 = dma.hbm_to_vmem [thread:$0]  %s1889_s3, 16, %s60_s30, [#allocation8]  }
  0x19   :  { %s1574_s18 = smov [#allocation2]   ;;  %s1575_s20 = smov [#allocation6]  }
  0x1a   :  { %s22_s19 = sshll.u32 %s1574_s18, 4  ;;  %s46_s21 = sshll.u32 %s1575_s20, 4  ;;  %s23_s19 = int_to_ptr.vmem [resolvable:$true] %s22_s19  ;;  %s47_s21 = int_to_ptr.vmem [resolvable:$true] %s46_s21 }
  0x1b   :  { %s1490_s22 = scalar_lea.vmem %s23_s19, 1024  ;;  %p1495_p11 = scmp.lt.s32.totalorder %s23_s19, %s23_s19 }
  0x1c   :  { %p1491_p10 = scmp.ne.s32.totalorder %s23_s19, %s1490_s22  ;;  %p1496_p12 = scmp.lt.s32.totalorder %s1490_s22, %s1490_s22 }
  0x1e   :  { %p1497_p13 = por %p1496_p12, %p1495_p11 }
  0x20   :  { %p1498_p0 = pnand %p1497_p13, %p1491_p10 }
  0x22   :  { %1501 = shalt.err (!%p1498_p0)
}
  0x23   :  { %28 = dma.hbm_to_vmem [thread:$0]  %s1886_s0, 1024, %s23_s19, [#allocation3], %s1572_s10, %s1572_s10, %s1573_s11  }
  0x24   :  { %s1510_s3 = scalar_lea.vmem %s47_s21, 2048  ;;  %p1515_p2 = scmp.lt.s32.totalorder %s47_s21, %s47_s21 }
  0x25   :  { %p1511_p1 = scmp.ne.s32.totalorder %s47_s21, %s1510_s3  ;;  %p1516_p3 = scmp.lt.s32.totalorder %s1510_s3, %s1510_s3 }
  0x27   :  { %p1517_p4 = por %p1516_p3, %p1515_p2 }
  0x29   :  { %p1518_p5 = pnand %p1517_p4, %p1511_p1 }
  0x2b   :  { %1521 = shalt.err (!%p1518_p5)
}
  0x2c   :  { %52 = dma.hbm_to_vmem [thread:$0]  %s1888_s2, 2048, %s47_s21, [#allocation5], %s1572_s10, %s1572_s10, %s1573_s11  }
  0x2d   :  { %s1576_s26 = smov [#allocation9]   ;;  %s1577_s28 = smov [#allocation10]  }
  0x2e   :  { %s68_s27 = sshll.u32 %s1576_s26, 4  ;;  %s82_s29 = sshll.u32 %s1577_s28, 4  ;;  %s69_s27 = int_to_ptr.vmem [resolvable:$true] %s68_s27  ;;  %s83_s29 = int_to_ptr.vmem [resolvable:$true] %s82_s29 }
  0x2f   :  { %s1530_s0 = scalar_lea.vmem %s69_s27, 8192  ;;  %p1535_p7 = scmp.lt.s32.totalorder %s69_s27, %s69_s27 }
  0x30   :  { %p1531_p6 = scmp.ne.s32.totalorder %s69_s27, %s1530_s0  ;;  %p1536_p8 = scmp.lt.s32.totalorder %s1530_s0, %s1530_s0 }
  0x32   :  { %p1537_p9 = por %p1536_p8, %p1535_p7 }
  0x34   :  { %p1538_p10 = pnand %p1537_p9, %p1531_p6 }
  0x36   :  { %1541 = shalt.err (!%p1538_p10)
}
  0x37   :  { %74 = dma.hbm_to_vmem [thread:$0]  %s1890_s4, 8192, %s69_s27, [#allocation8], %s1572_s10, %s1572_s10, %s1573_s11  }
  0x38   :  { %s1550_s2 = scalar_lea.vmem %s83_s29, 2048  ;;  %p1555_p12 = scmp.lt.s32.totalorder %s83_s29, %s83_s29 }
  0x39   :  { %p1551_p11 = scmp.ne.s32.totalorder %s83_s29, %s1550_s2  ;;  %p1556_p13 = scmp.lt.s32.totalorder %s1550_s2, %s1550_s2 }
  0x3b   :  { %p1557_p0 = por %p1556_p13, %p1555_p12 }
  0x3d   :  { %p1558_p1 = pnand %p1557_p0, %p1551_p11 }
  0x3f   :  { %1561 = shalt.err (!%p1558_p1)
}
  0x40   :  { %88 = dma.hbm_to_vmem [thread:$0]  %s1892_s6, 2048, %s83_s29, [#allocation11], %s1572_s10, %s1572_s10, %s1573_s11  }
  0x41   :  { %1562 = dma.done.wait [#allocation3], 1024  }
  0x42   :  { %1563 = vsyncadd [#allocation3], 4294966272 }
  0x43   :  { %1564 = dma.done.wait [#allocation5], 3072  }
  0x44   :  { %1565 = vsyncadd [#allocation5], 4294964224 }
  0x45   :  { %1566 = dma.done.wait [#allocation8], 8208  }
  0x46   :  { %1567 = vsyncadd [#allocation8], 4294959088 }
  0x47   :  { %1568 = dma.done.wait [#allocation11], 2048  }
  0x48   :  { %1569 = vsyncadd [#allocation11], 4294965248  ;;  %v140_v0 = vld [vmem:[#allocation6 + $0x78] sm:$0xff]  ;;  %v139_v1 = vld [vmem:[#allocation6 + $0x70] sm:$0xff]  ;;  %vm261_vm0 = vcmask 523264  }
  0x49   :  { %1258 = vmatprep.subr.mxu0 %v140_v0  ;;  %v138_v2 = vld [vmem:[#allocation6 + $0x68] sm:$0xff]  ;;  %v137_v3 = vld [vmem:[#allocation6 + $0x60] sm:$0xff]  ;;  %v136_v5 = vld [vmem:[#allocation6 + $0x58] sm:$0xff] }
  0x4a   :  { %1259 = vmatpush3.msra.mxu0 %v140_v0  ;;  %v117_v4 = vld [vmem:[#allocation2] sm:$0xff]  ;;  %v135_v6 = vld [vmem:[#allocation6 + $0x50] sm:$0xff]  ;;  %v134_v7 = vld [vmem:[#allocation6 + $0x48] sm:$0xff] }
  0x4b   :  { %1260 = vmatprep.subr.mxu0 %v139_v1  ;;  %1290 = vmatprep.mubr.f32.mxu0 %v117_v4  ;;  %v133_v8 = vld [vmem:[#allocation6 + $0x40] sm:$0xff]  ;;  %v132_v9 = vld [vmem:[#allocation6 + $0x38] sm:$0xff]  ;;  %v131_v10 = vld [vmem:[#allocation6 + $0x30] sm:$0xff] }
  0x4c   :  { %1261 = vmatpush3.msra.mxu0 %v139_v1  ;;  %v130_v11 = vld [vmem:[#allocation6 + $0x28] sm:$0xff]  ;;  %v129_v12 = vld [vmem:[#allocation6 + $0x20] sm:$0xff]  ;;  %v128_v13 = vld [vmem:[#allocation6 + $0x18] sm:$0xff] }
  0x4d   :  { %1262 = vmatprep.subr.mxu0 %v138_v2  ;;  %v127_v14 = vld [vmem:[#allocation6 + $0x10] sm:$0xff]  ;;  %v126_v15 = vld [vmem:[#allocation6 + $0x8] sm:$0xff]  ;;  %v125_v16 = vld [vmem:[#allocation6] sm:$0xff] }
  0x4e   :  { %1263 = vmatpush3.msra.mxu0 %v138_v2  ;;  %v118_v17 = vld [vmem:[#allocation2 + $0x8] sm:$0xff]  ;;  %v119_v18 = vld [vmem:[#allocation2 + $0x10] sm:$0xff]  ;;  %v120_v19 = vld [vmem:[#allocation2 + $0x18] sm:$0xff] }
  0x4f   :  { %1264 = vmatprep.subr.mxu0 %v137_v3  ;;  %v121_v20 = vld [vmem:[#allocation2 + $0x20] sm:$0xff]  ;;  %v122_v21 = vld [vmem:[#allocation2 + $0x28] sm:$0xff]  ;;  %v123_v22 = vld [vmem:[#allocation2 + $0x30] sm:$0xff] }
  0x50   :  { %1265 = vmatpush3.msra.mxu0 %v137_v3  ;;  %v124_v23 = vld [vmem:[#allocation2 + $0x38] sm:$0xff]  ;;  %v109_v24 = vld [vmem:[#allocation4] sm:$0xff]  ;;  %v1686_v50 = vld [vmem:[#allocation4 + $0x8] sm:$0xff] }
  0x51   :  { %1266 = vmatprep.subr.mxu0 %v136_v5  ;;  %1318 = vmatprep.mubr.msk.f32.mxu1 %vm261_vm0, %v109_v24  ;;  %v1045_v31 = vld [vmem:[#allocation7] ss:$0 sm:$0xff]  ;;  %v1688_v52 = vld [vmem:[#allocation4 + $0x10] sm:$0xff]  ;;  %v1694_v56 = vld [vmem:[#allocation4 + $0x18] sm:$0xff] }
  0x52   :  { %1267 = vmatpush3.msra.mxu0 %v136_v5  ;;  %v422_v51 = vld [vmem:[#allocation9 + $0xf8] sm:$0xff]  ;;  %v421_v54 = vld [vmem:[#allocation9 + $0xf0] sm:$0xff]  ;;  %v420_v57 = vld [vmem:[#allocation9 + $0xe8] sm:$0xff] }
  0x53   :  { %1268 = vmatprep.subr.mxu0 %v135_v6  ;;  %v406_v53 = vld [vmem:[#allocation9 + $0x78] sm:$0xff]  ;;  %v405_v55 = vld [vmem:[#allocation9 + $0x70] sm:$0xff]  ;;  %v404_v59 = vld [vmem:[#allocation9 + $0x68] sm:$0xff] }
  0x54   :  { %1269 = vmatpush3.msra.mxu0 %v135_v6  ;;  %v1696_v58 = vld [vmem:[#allocation4 + $0x20] sm:$0xff]  ;;  %v1702_v62 = vld [vmem:[#allocation4 + $0x28] sm:$0xff]  ;;  %v1704_v0 = vld [vmem:[#allocation4 + $0x30] sm:$0xff] }
  0x55   :  { %1270 = vmatprep.subr.mxu0 %v134_v7  ;;  %v419_v60 = vld [vmem:[#allocation9 + $0xe0] sm:$0xff]  ;;  %v418_v63 = vld [vmem:[#allocation9 + $0xd8] sm:$0xff]  ;;  %v417_v2 = vld [vmem:[#allocation9 + $0xd0] sm:$0xff] }
  0x56   :  { %1271 = vmatpush3.msra.mxu0 %v134_v7  ;;  %v403_v61 = vld [vmem:[#allocation9 + $0x60] sm:$0xff]  ;;  %v402_v1 = vld [vmem:[#allocation9 + $0x58] sm:$0xff]  ;;  %v401_v3 = vld [vmem:[#allocation9 + $0x50] sm:$0xff] }
  0x57   :  { %1272 = vmatprep.subr.mxu0 %v133_v8  ;;  %v1710_v4 = vld [vmem:[#allocation4 + $0x38] sm:$0xff]  ;;  %v416_v5 = vld [vmem:[#allocation9 + $0xc8] sm:$0xff]  ;;  %v415_v7 = vld [vmem:[#allocation9 + $0xc0] sm:$0xff] }
  0x58   :  { %1273 = vmatpush3.msra.mxu0 %v133_v8  ;;  %v400_v6 = vld [vmem:[#allocation9 + $0x48] sm:$0xff]  ;;  %v399_v8 = vld [vmem:[#allocation9 + $0x40] sm:$0xff] }
  0x59   :  { %1274 = vmatprep.subr.mxu0 %v132_v9 }
  0x5a   :  { %1275 = vmatpush3.msra.mxu0 %v132_v9  ;;  %v414_v9 = vld [vmem:[#allocation9 + $0xb8] sm:$0xff] }
  0x5b   :  { %1276 = vmatprep.subr.mxu0 %v131_v10 }
  0x5c   :  { %1277 = vmatpush3.msra.mxu0 %v131_v10  ;;  %v398_v10 = vld [vmem:[#allocation9 + $0x38] sm:$0xff] }
  0x5d   :  { %1278 = vmatprep.subr.mxu0 %v130_v11 }
  0x5e   :  { %1279 = vmatpush3.msra.mxu0 %v130_v11  ;;  %v413_v11 = vld [vmem:[#allocation9 + $0xb0] sm:$0xff] }
  0x5f   :  { %1280 = vmatprep.subr.mxu0 %v129_v12 }
  0x60   :  { %1281 = vmatpush3.msra.mxu0 %v129_v12  ;;  %v397_v12 = vld [vmem:[#allocation9 + $0x30] sm:$0xff] }
  0x61   :  { %1282 = vmatprep.subr.mxu0 %v128_v13 }
  0x62   :  { %1283 = vmatpush3.msra.mxu0 %v128_v13  ;;  %v412_v13 = vld [vmem:[#allocation9 + $0xa8] sm:$0xff] }
  0x63   :  { %1284 = vmatprep.subr.mxu0 %v127_v14 }
  0x64   :  { %1285 = vmatpush3.msra.mxu0 %v127_v14  ;;  %v396_v14 = vld [vmem:[#allocation9 + $0x28] sm:$0xff] }
  0x65   :  { %1286 = vmatprep.subr.mxu0 %v126_v15 }
  0x66   :  { %1287 = vmatpush3.msra.mxu0 %v126_v15  ;;  %v411_v15 = vld [vmem:[#allocation9 + $0xa0] sm:$0xff] }
  0x67   :  { %1288 = vmatprep.subr.mxu0 %v125_v16 }
  0x68   :  { %1289 = vmatpush3.msra.mxu0 %v125_v16  ;;  %v395_v16 = vld [vmem:[#allocation9 + $0x20] sm:$0xff] }
  0x69   :  { %1291 = vmatmul.mubr.f32.vlgmr.msra.gmra.mxu0 %v118_v17  ;;  %v410_v17 = vld [vmem:[#allocation9 + $0x98] sm:$0xff] }
  0x6a   :  { %1293 = vmatprep.mubr.f32.mxu0 %v119_v18  ;;  %v394_v18 = vld [vmem:[#allocation9 + $0x18] sm:$0xff] }
  0x6d   :  { %1294 = vmatmul.mubr.f32.gmra.mxu0 %v120_v19  ;;  %v409_v19 = vld [vmem:[#allocation9 + $0x90] sm:$0xff] }
  0x6e   :  { %1296 = vmatprep.mubr.f32.mxu0 %v121_v20  ;;  %v393_v20 = vld [vmem:[#allocation9 + $0x10] sm:$0xff] }
  0x71   :  { %1297 = vmatmul.mubr.f32.gmra.mxu0 %v122_v21  ;;  %v408_v21 = vld [vmem:[#allocation9 + $0x88] sm:$0xff] }
  0x72   :  { %1299 = vmatprep.mubr.f32.mxu0 %v123_v22  ;;  %v392_v22 = vld [vmem:[#allocation9 + $0x8] sm:$0xff] }
  0x75   :  { %1300 = vmatmul.mubr.f32.gmra.mxu0 %v124_v23  ;;  %v407_v23 = vld [vmem:[#allocation9 + $0x80] sm:$0xff] }
  0x76   :  { %1346 = vmatprep.mubr.msk.f32.mxu0 %vm261_vm0, %v109_v24  ;;  %v391_v24 = vld [vmem:[#allocation9] sm:$0xff] }
 0x129   :  { %v1292_v25 = vpop.f32.mrf.mxu0 }
 0x12a   :  { %v220_v44 = vadd.f32 %v1292_v25, %v1045_v31 }
 0x12b   :  { %v214_v26 = vpop.f32.mrf.mxu0 }
 0x12c   :  { %v215_v46 = vadd.f32 %v1045_v31, %v214_v26  ;;  %v1680_v48 = vmax.f32 %v220_v44, 0.0 }
 0x12d   :  { %v1295_v27 = vpop.f32.mrf.mxu0 }
 0x12e   :  { %v230_v40 = vadd.f32 %v1295_v27, %v1045_v31  ;;  %v253_v49 = vmax.f32 %v215_v46, 0.0 }
 0x12f   :  { %v224_v28 = vpop.f32.mrf.mxu0 }
 0x130   :  { %v225_v42 = vadd.f32 %v1045_v31, %v224_v28  ;;  %v1672_v45 = vmax.f32 %v230_v40, 0.0 }
 0x131   :  { %v1298_v29 = vpop.f32.mrf.mxu0 }
 0x132   :  { %v240_v35 = vadd.f32 %v1298_v29, %v1045_v31  ;;  %v1676_v47 = vmax.f32 %v225_v42, 0.0 }
 0x133   :  { %v234_v30 = vpop.f32.mrf.mxu0 }
 0x134   :  { %v235_v38 = vadd.f32 %v1045_v31, %v234_v30  ;;  %v1664_v41 = vmax.f32 %v240_v35, 0.0 }
 0x135   :  { %v1301_v32 = vpop.f32.mrf.mxu0 }
 0x136   :  { %v250_v33 = vadd.f32 %v1301_v32, %v1045_v31  ;;  %v1668_v43 = vmax.f32 %v235_v38, 0.0 }
 0x137   :  { %v244_v34 = vpop.f32.mrf.mxu0 }
 0x138   :  { %v1658_v36 = vmax.f32 %v250_v33, 0.0  ;;  %v245_v37 = vadd.f32 %v1045_v31, %v244_v34 }
 0x13a   :  { %v1660_v39 = vmax.f32 %v245_v37, 0.0  ;;  %1302 = vmatprep.subr.mxu1 %v1658_v36 }
 0x13b   :  { %1303 = vmatpush3.msra.mxu1 %v1658_v36 }
 0x13c   :  { %1304 = vmatprep.subr.mxu1 %v1660_v39 }
 0x13d   :  { %1305 = vmatpush3.msra.mxu1 %v1660_v39 }
 0x13e   :  { %1306 = vmatprep.subr.mxu1 %v1664_v41 }
 0x13f   :  { %1307 = vmatpush3.msra.mxu1 %v1664_v41 }
 0x140   :  { %1308 = vmatprep.subr.mxu1 %v1668_v43 }
 0x141   :  { %1309 = vmatpush3.msra.mxu1 %v1668_v43 }
 0x142   :  { %1310 = vmatprep.subr.mxu1 %v1672_v45 }
 0x143   :  { %1311 = vmatpush3.msra.mxu1 %v1672_v45 }
 0x144   :  { %1312 = vmatprep.subr.mxu1 %v1676_v47 }
 0x145   :  { %1313 = vmatpush3.msra.mxu1 %v1676_v47 }
 0x146   :  { %1314 = vmatprep.subr.mxu1 %v1680_v48 }
 0x147   :  { %1315 = vmatpush3.msra.mxu1 %v1680_v48 }
 0x148   :  { %1316 = vmatprep.subr.mxu1 %v253_v49 }
 0x149   :  { %1317 = vmatpush3.msra.mxu1 %v253_v49 }
 0x14a   :  { %1319 = vmatmul.mubr.msk.f32.vlgmr.msra.gmra.mxu1 %vm261_vm0, %v1686_v50  ;;  %1106 = vmatprep.subr.mxu1 %v422_v51 }
 0x14b   :  { %1321 = vmatprep.mubr.msk.f32.mxu1 %vm261_vm0, %v1688_v52  ;;  %1107 = vmatpush3.msra.mxu1 %v406_v53 }
 0x14c   :  { %1108 = vmatprep.subr.mxu1 %v421_v54  ;;  %v1054_v54 = vld [vmem:[%s1891_s5] ss:$0 sm:$0xff] }
 0x14d   :  { %1109 = vmatpush3.msra.mxu1 %v405_v55 }
 0x14e   :  { %1322 = vmatmul.mubr.msk.f32.gmra.mxu1 %vm261_vm0, %v1694_v56  ;;  %1110 = vmatprep.subr.mxu1 %v420_v57 }
 0x14f   :  { %1324 = vmatprep.mubr.msk.f32.mxu1 %vm261_vm0, %v1696_v58  ;;  %1111 = vmatpush3.msra.mxu1 %v404_v59 }
 0x150   :  { %1112 = vmatprep.subr.mxu1 %v419_v60 }
 0x151   :  { %1113 = vmatpush3.msra.mxu1 %v403_v61 }
 0x152   :  { %1325 = vmatmul.mubr.msk.f32.gmra.mxu1 %vm261_vm0, %v1702_v62  ;;  %1114 = vmatprep.subr.mxu1 %v418_v63 }
 0x153   :  { %1327 = vmatprep.mubr.msk.f32.mxu1 %vm261_vm0, %v1704_v0  ;;  %1115 = vmatpush3.msra.mxu1 %v402_v1 }
 0x154   :  { %1116 = vmatprep.subr.mxu1 %v417_v2 }
 0x155   :  { %1117 = vmatpush3.msra.mxu1 %v401_v3 }
 0x156   :  { %1328 = vmatmul.mubr.msk.f32.gmra.mxu1 %vm261_vm0, %v1710_v4  ;;  %1118 = vmatprep.subr.mxu1 %v416_v5 }
 0x157   :  { %494 = vmatprep.mubr.f32.mxu1 %v253_v49  ;;  %1119 = vmatpush3.msra.mxu1 %v400_v6 }
 0x158   :  { %1120 = vmatprep.subr.mxu1 %v415_v7 }
 0x159   :  { %1121 = vmatpush3.msra.mxu1 %v399_v8 }
 0x15a   :  { %1122 = vmatprep.subr.mxu1 %v414_v9 }
 0x15b   :  { %1123 = vmatpush3.msra.mxu1 %v398_v10 }
 0x15c   :  { %1124 = vmatprep.subr.mxu1 %v413_v11 }
 0x15d   :  { %1125 = vmatpush3.msra.mxu1 %v397_v12 }
 0x15e   :  { %1126 = vmatprep.subr.mxu1 %v412_v13 }
 0x15f   :  { %1127 = vmatpush3.msra.mxu1 %v396_v14 }
 0x160   :  { %1128 = vmatprep.subr.mxu1 %v411_v15 }
 0x161   :  { %1129 = vmatpush3.msra.mxu1 %v395_v16 }
 0x162   :  { %1130 = vmatprep.subr.mxu1 %v410_v17  ;;  %v680_v17 = vld [vmem:[#allocation9 + $0x1f8] sm:$0xff] }
 0x163   :  { %1131 = vmatpush3.msra.mxu1 %v394_v18  ;;  %v664_v18 = vld [vmem:[#allocation9 + $0x178] sm:$0xff] }
 0x164   :  { %1132 = vmatprep.subr.mxu1 %v409_v19  ;;  %v679_v19 = vld [vmem:[#allocation9 + $0x1f0] sm:$0xff] }
 0x165   :  { %1133 = vmatpush3.msra.mxu1 %v393_v20  ;;  %v663_v20 = vld [vmem:[#allocation9 + $0x170] sm:$0xff] }
 0x166   :  { %1134 = vmatprep.subr.mxu1 %v408_v21  ;;  %v678_v21 = vld [vmem:[#allocation9 + $0x1e8] sm:$0xff] }
 0x167   :  { %1135 = vmatpush3.msra.mxu1 %v392_v22  ;;  %v662_v22 = vld [vmem:[#allocation9 + $0x168] sm:$0xff] }
 0x168   :  { %1136 = vmatprep.subr.mxu1 %v407_v23  ;;  %v677_v23 = vld [vmem:[#allocation9 + $0x1e0] sm:$0xff] }
 0x169   :  { %1137 = vmatpush3.msra.mxu1 %v391_v24  ;;  %v661_v24 = vld [vmem:[#allocation9 + $0x160] sm:$0xff] }
 0x20a   :  { %v1320_v25 = vpop.f32.mrf.mxu1 }
 0x20c   :  { %v352_v26 = vpop.f32.mrf.mxu1 }
 0x20d   :  { %495 = vmatmul.mubr.f32.vlgmr.msra.gmra.mxu1 %v352_v26  ;;  %v659_v26 = vld [vmem:[#allocation9 + $0x150] sm:$0xff] }
 0x20e   :  { %499 = vmatprep.mubr.f32.mxu1 %v1680_v48  ;;  %v1323_v27 = vpop.f32.mrf.mxu1 }
 0x210   :  { %v362_v28 = vpop.f32.mrf.mxu1 }
 0x211   :  { %500 = vmatmul.mubr.f32.gmra.mxu1 %v1320_v25  ;;  %v660_v25 = vld [vmem:[#allocation9 + $0x158] sm:$0xff] }
 0x212   :  { %504 = vmatprep.mubr.f32.mxu1 %v1676_v47  ;;  %v1326_v29 = vpop.f32.mrf.mxu1 }
 0x214   :  { %v372_v30 = vpop.f32.mrf.mxu1 }
 0x215   :  { %505 = vmatmul.mubr.f32.gmra.mxu1 %v362_v28  ;;  %v657_v28 = vld [vmem:[#allocation9 + $0x140] sm:$0xff] }
 0x216   :  { %509 = vmatprep.mubr.f32.mxu1 %v1672_v45  ;;  %v1329_v31 = vpop.f32.mrf.mxu1 }
 0x218   :  { %v382_v32 = vpop.f32.mrf.mxu1 }
 0x219   :  { %510 = vmatmul.mubr.f32.gmra.mxu1 %v1323_v27  ;;  %v658_v27 = vld [vmem:[#allocation9 + $0x148] sm:$0xff] }
 0x21a   :  { %514 = vmatprep.mubr.f32.mxu1 %v1668_v43 }
 0x21d   :  { %515 = vmatmul.mubr.f32.gmra.mxu1 %v372_v30  ;;  %v671_v30 = vld [vmem:[#allocation9 + $0x1b0] sm:$0xff] }
 0x21e   :  { %519 = vmatprep.mubr.f32.mxu1 %v1664_v41 }
 0x221   :  { %520 = vmatmul.mubr.f32.gmra.mxu1 %v1326_v29  ;;  %v672_v29 = vld [vmem:[#allocation9 + $0x1b8] sm:$0xff] }
 0x222   :  { %524 = vmatprep.mubr.f32.mxu1 %v1660_v39 }
 0x225   :  { %525 = vmatmul.mubr.f32.gmra.mxu1 %v382_v32  ;;  %v654_v32 = vld [vmem:[#allocation9 + $0x128] sm:$0xff] }
 0x226   :  { %529 = vmatprep.mubr.f32.mxu1 %v1658_v36 }
 0x229   :  { %530 = vmatmul.mubr.f32.gmra.mxu1 %v1329_v31  ;;  %v670_v31 = vld [vmem:[#allocation9 + $0x1a8] sm:$0xff] }
 0x2cd   :  { %v1138_v33 = vpop.f32.mrf.mxu1 }
 0x2cf   :  { %v1139_v34 = vpop.f32.mrf.mxu1 }
 0x2d0   :  { %v1140_v8 = vadd.f32 %v1139_v34, %v1138_v33  ;;  %v669_v33 = vld [vmem:[#allocation9 + $0x1a0] sm:$0xff] }
 0x2d1   :  { %v1141_v35 = vpop.f32.mrf.mxu1  ;;  %v653_v34 = vld [vmem:[#allocation9 + $0x120] sm:$0xff] }
 0x2d2   :  { %v497_v13 = vadd.f32 %v1140_v8, %v1054_v54  ;;  %v797_v8 = vld [vmem:[#allocation10 + $0x18] sm:$0xff] }
 0x2d3   :  { %v1142_v37 = vpop.f32.mrf.mxu1 }
 0x2d4   :  { %v1143_v5 = vadd.f32 %v1142_v37, %v1141_v35  ;;  %v535_v16 = vmax.f32 %v497_v13, 0.0  ;;  %v652_v35 = vld [vmem:[#allocation9 + $0x118] sm:$0xff]  ;;  %v667_v37 = vld [vmem:[#allocation9 + $0x190] sm:$0xff] }
 0x2d5   :  { %v1144_v38 = vpop.f32.mrf.mxu1 }
 0x2d6   :  { %v502_v11 = vadd.f32 %v1143_v5, %v1054_v54 }
 0x2d7   :  { %v1145_v40 = vpop.f32.mrf.mxu1 }
 0x2d8   :  { %v1146_v1 = vadd.f32 %v1145_v40, %v1144_v38  ;;  %v1746_v15 = vmax.f32 %v502_v11, 0.0  ;;  %v651_v38 = vld [vmem:[#allocation9 + $0x110] sm:$0xff]  ;;  %v666_v40 = vld [vmem:[#allocation9 + $0x188] sm:$0xff] }
 0x2d9   :  { %v1147_v42 = vpop.f32.mrf.mxu1 }
 0x2da   :  { %v507_v9 = vadd.f32 %v1146_v1, %v1054_v54 }
 0x2db   :  { %v1148_v43 = vpop.f32.mrf.mxu1 }
 0x2dc   :  { %v1149_v60 = vadd.f32 %v1148_v43, %v1147_v42  ;;  %v1742_v14 = vmax.f32 %v507_v9, 0.0  ;;  %v650_v42 = vld [vmem:[#allocation9 + $0x108] sm:$0xff]  ;;  %v665_v43 = vld [vmem:[#allocation9 + $0x180] sm:$0xff]  ;;  %v796_v9 = vld [vmem:[#allocation10 + $0x10] sm:$0xff] }
 0x2dd   :  { %v1150_v44 = vpop.f32.mrf.mxu1 }
 0x2de   :  { %v512_v6 = vadd.f32 %v1149_v60, %v1054_v54 }
 0x2df   :  { %v1151_v45 = vpop.f32.mrf.mxu1 }
 0x2e0   :  { %v1152_v55 = vadd.f32 %v1151_v45, %v1150_v44  ;;  %v1738_v12 = vmax.f32 %v512_v6, 0.0  ;;  %v649_v44 = vld [vmem:[#allocation9 + $0x100] sm:$0xff]  ;;  %v809_v45 = vld [vmem:[#allocation10 + $0x78] sm:$0xff] }
 0x2e1   :  { %v1153_v41 = vpop.f32.mrf.mxu1  ;;  %1358 = vmatprep.subr.mxu1 %v809_v45  ;;  %v798_v6 = vld [vmem:[#allocation10 + $0x20] sm:$0xff] }
 0x2e2   :  { %v517_v2 = vadd.f32 %v1152_v55, %v1054_v54  ;;  %1359 = vmatpush3.msra.mxu1 %v809_v45 }
 0x2e3   :  { %v1154_v46 = vpop.f32.mrf.mxu1 }
 0x2e4   :  { %v1155_v53 = vadd.f32 %v1154_v46, %v1153_v41  ;;  %v1734_v10 = vmax.f32 %v517_v2, 0.0  ;;  %v808_v41 = vld [vmem:[#allocation10 + $0x70] sm:$0xff]  ;;  %v807_v46 = vld [vmem:[#allocation10 + $0x68] sm:$0xff] }
 0x2e5   :  { %v1156_v47 = vpop.f32.mrf.mxu1  ;;  %1360 = vmatprep.subr.mxu1 %v808_v41 }
 0x2e6   :  { %v522_v61 = vadd.f32 %v1155_v53, %v1054_v54  ;;  %1361 = vmatpush3.msra.mxu1 %v808_v41  ;;  %v801_v53 = vld [vmem:[#allocation10 + $0x38] sm:$0xff] }
 0x2e7   :  { %v1157_v48 = vpop.f32.mrf.mxu1  ;;  %1362 = vmatprep.subr.mxu1 %v807_v46 }
 0x2e8   :  { %v1158_v49 = vadd.f32 %v1157_v48, %v1156_v47  ;;  %v1730_v7 = vmax.f32 %v522_v61, 0.0  ;;  %v806_v47 = vld [vmem:[#allocation10 + $0x60] sm:$0xff]  ;;  %1363 = vmatpush3.msra.mxu1 %v807_v46  ;;  %v805_v48 = vld [vmem:[#allocation10 + $0x58] sm:$0xff] }
 0x2e9   :  { %v1159_v39 = vpop.f32.mrf.mxu1  ;;  %1364 = vmatprep.subr.mxu1 %v806_v47 }
 0x2ea   :  { %v527_v57 = vadd.f32 %v1158_v49, %v1054_v54  ;;  %1365 = vmatpush3.msra.mxu1 %v806_v47  ;;  %v803_v49 = vld [vmem:[#allocation10 + $0x48] sm:$0xff] }
 0x2eb   :  { %v1160_v51 = vpop.f32.mrf.mxu1  ;;  %1366 = vmatprep.subr.mxu1 %v805_v48 }
 0x2ec   :  { %v1161_v36 = vadd.f32 %v1160_v51, %v1159_v39  ;;  %v1726_v3 = vmax.f32 %v527_v57, 0.0  ;;  %v804_v39 = vld [vmem:[#allocation10 + $0x50] sm:$0xff]  ;;  %1367 = vmatpush3.msra.mxu1 %v805_v48  ;;  %v802_v51 = vld [vmem:[#allocation10 + $0x40] sm:$0xff] }
 0x2ed   :  { %1368 = vmatprep.subr.mxu1 %v804_v39 }
 0x2ee   :  { %v532_v59 = vadd.f32 %v1161_v36, %v1054_v54  ;;  %1369 = vmatpush3.msra.mxu1 %v804_v39  ;;  %v800_v36 = vld [vmem:[#allocation10 + $0x30] sm:$0xff]  ;;  %v799_v54 = vld [vmem:[#allocation10 + $0x28] sm:$0xff] }
 0x2ef   :  { %1370 = vmatprep.subr.mxu1 %v803_v49 }
 0x2f0   :  { %v1724_v63 = vmax.f32 %v532_v59, 0.0  ;;  %1371 = vmatpush3.msra.mxu1 %v803_v49 }
 0x2f1   :  { %1372 = vmatprep.subr.mxu1 %v802_v51 }
 0x2f2   :  { %1330 = vmatprep.subr.mxu0 %v1724_v63  ;;  %1373 = vmatpush3.msra.mxu1 %v802_v51 }
 0x2f3   :  { %1331 = vmatpush3.msra.mxu0 %v1724_v63  ;;  %1374 = vmatprep.subr.mxu1 %v801_v53 }
 0x2f4   :  { %1332 = vmatprep.subr.mxu0 %v1726_v3  ;;  %1375 = vmatpush3.msra.mxu1 %v801_v53 }
 0x2f5   :  { %1333 = vmatpush3.msra.mxu0 %v1726_v3  ;;  %1376 = vmatprep.subr.mxu1 %v800_v36 }
 0x2f6   :  { %1334 = vmatprep.subr.mxu0 %v1730_v7  ;;  %1377 = vmatpush3.msra.mxu1 %v800_v36 }
 0x2f7   :  { %1335 = vmatpush3.msra.mxu0 %v1730_v7  ;;  %1378 = vmatprep.subr.mxu1 %v799_v54 }
 0x2f8   :  { %1336 = vmatprep.subr.mxu0 %v1734_v10  ;;  %1379 = vmatpush3.msra.mxu1 %v799_v54 }
 0x2f9   :  { %1337 = vmatpush3.msra.mxu0 %v1734_v10  ;;  %1380 = vmatprep.subr.mxu1 %v798_v6 }
 0x2fa   :  { %1338 = vmatprep.subr.mxu0 %v1738_v12  ;;  %1381 = vmatpush3.msra.mxu1 %v798_v6 }
 0x2fb   :  { %1339 = vmatpush3.msra.mxu0 %v1738_v12  ;;  %1382 = vmatprep.subr.mxu1 %v797_v8 }
 0x2fc   :  { %1340 = vmatprep.subr.mxu0 %v1742_v14  ;;  %1383 = vmatpush3.msra.mxu1 %v797_v8 }
 0x2fd   :  { %1341 = vmatpush3.msra.mxu0 %v1742_v14  ;;  %1384 = vmatprep.subr.mxu1 %v796_v9 }
 0x2fe   :  { %1342 = vmatprep.subr.mxu0 %v1746_v15  ;;  %1385 = vmatpush3.msra.mxu1 %v796_v9 }
 0x2ff   :  { %1343 = vmatpush3.msra.mxu0 %v1746_v15 }
 0x300   :  { %1344 = vmatprep.subr.mxu0 %v535_v16 }
 0x301   :  { %1345 = vmatpush3.msra.mxu0 %v535_v16 }
 0x302   :  { %1347 = vmatmul.mubr.msk.f32.vlgmr.msra.gmra.mxu0 %vm261_vm0, %v1686_v50  ;;  %1178 = vmatprep.subr.mxu0 %v680_v17  ;;  %v676_v50 = vld [vmem:[#allocation9 + $0x1d8] sm:$0xff] }
 0x303   :  { %1349 = vmatprep.mubr.msk.f32.mxu0 %vm261_vm0, %v1688_v52  ;;  %1179 = vmatpush3.msra.mxu0 %v664_v18  ;;  %v675_v52 = vld [vmem:[#allocation9 + $0x1d0] sm:$0xff] }
 0x304   :  { %1180 = vmatprep.subr.mxu0 %v679_v19 }
 0x305   :  { %1181 = vmatpush3.msra.mxu0 %v663_v20 }
 0x306   :  { %1350 = vmatmul.mubr.msk.f32.gmra.mxu0 %vm261_vm0, %v1694_v56  ;;  %1182 = vmatprep.subr.mxu0 %v678_v21  ;;  %v674_v56 = vld [vmem:[#allocation9 + $0x1c8] sm:$0xff] }
 0x307   :  { %1352 = vmatprep.mubr.msk.f32.mxu0 %vm261_vm0, %v1696_v58  ;;  %1183 = vmatpush3.msra.mxu0 %v662_v22  ;;  %v673_v58 = vld [vmem:[#allocation9 + $0x1c0] sm:$0xff] }
 0x308   :  { %1184 = vmatprep.subr.mxu0 %v677_v23 }
 0x309   :  { %1185 = vmatpush3.msra.mxu0 %v661_v24 }
 0x30a   :  { %1353 = vmatmul.mubr.msk.f32.gmra.mxu0 %vm261_vm0, %v1702_v62  ;;  %1186 = vmatprep.subr.mxu0 %v676_v50  ;;  %v656_v62 = vld [vmem:[#allocation9 + $0x138] sm:$0xff] }
 0x30b   :  { %1355 = vmatprep.mubr.msk.f32.mxu0 %vm261_vm0, %v1704_v0  ;;  %1187 = vmatpush3.msra.mxu0 %v660_v25  ;;  %v655_v0 = vld [vmem:[#allocation9 + $0x130] sm:$0xff] }
 0x30c   :  { %1188 = vmatprep.subr.mxu0 %v675_v52 }
 0x30d   :  { %1189 = vmatpush3.msra.mxu0 %v659_v26 }
 0x30e   :  { %1356 = vmatmul.mubr.msk.f32.gmra.mxu0 %vm261_vm0, %v1710_v4  ;;  %1190 = vmatprep.subr.mxu0 %v674_v56  ;;  %v668_v4 = vld [vmem:[#allocation9 + $0x198] sm:$0xff] }
 0x30f   :  { %753 = vmatprep.mubr.f32.mxu0 %v535_v16  ;;  %1191 = vmatpush3.msra.mxu0 %v658_v27 }
 0x310   :  { %1192 = vmatprep.subr.mxu0 %v673_v58 }
 0x311   :  { %1193 = vmatpush3.msra.mxu0 %v657_v28 }
 0x312   :  { %1194 = vmatprep.subr.mxu0 %v672_v29 }
 0x313   :  { %1195 = vmatpush3.msra.mxu0 %v656_v62 }
 0x314   :  { %1196 = vmatprep.subr.mxu0 %v671_v30 }
 0x315   :  { %1197 = vmatpush3.msra.mxu0 %v655_v0 }
 0x316   :  { %1198 = vmatprep.subr.mxu0 %v670_v31 }
 0x317   :  { %1199 = vmatpush3.msra.mxu0 %v654_v32 }
 0x318   :  { %1200 = vmatprep.subr.mxu0 %v669_v33 }
 0x319   :  { %1201 = vmatpush3.msra.mxu0 %v653_v34 }
 0x31a   :  { %1202 = vmatprep.subr.mxu0 %v668_v4 }
 0x31b   :  { %1203 = vmatpush3.msra.mxu0 %v652_v35  ;;  %v922_v35 = vlaneseq }
 0x31c   :  { %1204 = vmatprep.subr.mxu0 %v667_v37 }
 0x31d   :  { %1205 = vmatpush3.msra.mxu0 %v651_v38  ;;  %v1776_v37 = vand.u32 127, %v922_v35  ;;  %v1065_v38 = vld [vmem:[%s1893_s7] ss:$0 sm:$0xff] }
 0x31e   :  { %1206 = vmatprep.subr.mxu0 %v666_v40 }
 0x31f   :  { %1207 = vmatpush3.msra.mxu0 %v650_v42  ;;  %vm924_vm1 = vcmp.lt.s32.totalorder %v1776_v37, 8 }
 0x320   :  { %1208 = vmatprep.subr.mxu0 %v665_v43 }
 0x321   :  { %1209 = vmatpush3.msra.mxu0 %v649_v44 }
 0x3c2   :  { %v1348_v55 = vpop.f32.mrf.mxu0 }
 0x3c4   :  { %v609_v57 = vpop.f32.mrf.mxu0 }
 0x3c5   :  { %754 = vmatmul.mubr.f32.vlgmr.msra.gmra.mxu0 %v609_v57 }
 0x3c6   :  { %758 = vmatprep.mubr.f32.mxu0 %v1746_v15  ;;  %v1351_v59 = vpop.f32.mrf.mxu0 }
 0x3c8   :  { %v619_v60 = vpop.f32.mrf.mxu0 }
 0x3c9   :  { %759 = vmatmul.mubr.f32.gmra.mxu0 %v1348_v55 }
 0x3ca   :  { %763 = vmatprep.mubr.f32.mxu0 %v1742_v14  ;;  %v1354_v61 = vpop.f32.mrf.mxu0 }
 0x3cc   :  { %v629_v1 = vpop.f32.mrf.mxu0 }
 0x3cd   :  { %764 = vmatmul.mubr.f32.gmra.mxu0 %v619_v60 }
 0x3ce   :  { %768 = vmatprep.mubr.f32.mxu0 %v1738_v12  ;;  %v1357_v2 = vpop.f32.mrf.mxu0 }
 0x3d0   :  { %v639_v5 = vpop.f32.mrf.mxu0 }
 0x3d1   :  { %769 = vmatmul.mubr.f32.gmra.mxu0 %v1351_v59 }
 0x3d2   :  { %773 = vmatprep.mubr.f32.mxu0 %v1734_v10  ;;  %v795_v10 = vld [vmem:[#allocation10 + $0x8] sm:$0xff] }
 0x3d3   :  { %1386 = vmatprep.subr.mxu1 %v795_v10 }
 0x3d4   :  { %1387 = vmatpush3.msra.mxu1 %v795_v10 }
 0x3d5   :  { %774 = vmatmul.mubr.f32.gmra.mxu0 %v629_v1 }
 0x3d6   :  { %778 = vmatprep.mubr.f32.mxu0 %v1730_v7  ;;  %v794_v7 = vld [vmem:[#allocation10] sm:$0xff] }
 0x3d7   :  { %1388 = vmatprep.subr.mxu1 %v794_v7 }
 0x3d8   :  { %1389 = vmatpush3.msra.mxu1 %v794_v7 }
 0x3d9   :  { %779 = vmatmul.mubr.f32.gmra.mxu0 %v1354_v61 }
 0x3da   :  { %783 = vmatprep.mubr.f32.mxu0 %v1726_v3 }
 0x3dd   :  { %784 = vmatmul.mubr.f32.gmra.mxu0 %v639_v5 }
 0x3de   :  { %788 = vmatprep.mubr.f32.mxu0 %v1724_v63  ;;  %v1064_v63 = vld [vmem:[%s1891_s5 + $0x1] ss:$0 sm:$0xff] }
 0x3e1   :  { %789 = vmatmul.mubr.f32.gmra.mxu0 %v1357_v2 }
 0x485   :  { %v1210_v3 = vpop.f32.mrf.mxu0 }
 0x487   :  { %v1211_v11 = vpop.f32.mrf.mxu0 }
 0x488   :  { %v1212_v12 = vadd.f32 %v1211_v11, %v1210_v3 }
 0x489   :  { %v1213_v13 = vpop.f32.mrf.mxu0 }
 0x48a   :  { %v756_v14 = vadd.f32 %v1212_v12, %v1064_v63 }
 0x48b   :  { %v1214_v15 = vpop.f32.mrf.mxu0 }
 0x48c   :  { %v1215_v16 = vadd.f32 %v1214_v15, %v1213_v13  ;;  %1390 = vmatprep.mubr.f32.mxu1 %v756_v14 }
 0x48d   :  { %v1216_v17 = vpop.f32.mrf.mxu0 }
 0x48e   :  { %v761_v18 = vadd.f32 %v1215_v16, %v1064_v63 }
 0x48f   :  { %v1217_v19 = vpop.f32.mrf.mxu0 }
 0x490   :  { %v1218_v20 = vadd.f32 %v1217_v19, %v1216_v17  ;;  %1391 = vmatmul.mubr.f32.vlgmr.msra.gmra.mxu1 %v761_v18 }
 0x491   :  { %v1219_v21 = vpop.f32.mrf.mxu0 }
 0x492   :  { %v766_v22 = vadd.f32 %v1218_v20, %v1064_v63 }
 0x493   :  { %v1220_v23 = vpop.f32.mrf.mxu0 }
 0x494   :  { %v1221_v24 = vadd.f32 %v1220_v23, %v1219_v21  ;;  %1393 = vmatprep.mubr.f32.mxu1 %v766_v22 }
 0x495   :  { %v1222_v50 = vpop.f32.mrf.mxu0 }
 0x496   :  { %v771_v25 = vadd.f32 %v1221_v24, %v1064_v63 }
 0x497   :  { %v1223_v52 = vpop.f32.mrf.mxu0 }
 0x498   :  { %v1224_v26 = vadd.f32 %v1223_v52, %v1222_v50  ;;  %1394 = vmatmul.mubr.f32.gmra.mxu1 %v771_v25 }
 0x499   :  { %v1225_v56 = vpop.f32.mrf.mxu0 }
 0x49a   :  { %v776_v27 = vadd.f32 %v1224_v26, %v1064_v63 }
 0x49b   :  { %v1226_v58 = vpop.f32.mrf.mxu0 }
 0x49c   :  { %v1227_v28 = vadd.f32 %v1226_v58, %v1225_v56  ;;  %1396 = vmatprep.mubr.f32.mxu1 %v776_v27 }
 0x49d   :  { %v1228_v29 = vpop.f32.mrf.mxu0 }
 0x49e   :  { %v781_v62 = vadd.f32 %v1227_v28, %v1064_v63 }
 0x49f   :  { %v1229_v30 = vpop.f32.mrf.mxu0 }
 0x4a0   :  { %v1230_v0 = vadd.f32 %v1229_v30, %v1228_v29  ;;  %1397 = vmatmul.mubr.f32.gmra.mxu1 %v781_v62 }
 0x4a1   :  { %v1231_v31 = vpop.f32.mrf.mxu0 }
 0x4a2   :  { %v786_v32 = vadd.f32 %v1230_v0, %v1064_v63 }
 0x4a3   :  { %v1232_v33 = vpop.f32.mrf.mxu0 }
 0x4a4   :  { %v1233_v34 = vadd.f32 %v1232_v33, %v1231_v31  ;;  %1399 = vmatprep.mubr.f32.mxu1 %v786_v32 }
 0x4a6   :  { %v791_v4 = vadd.f32 %v1233_v34, %v1064_v63 }
 0x4a8   :  { %1400 = vmatmul.mubr.f32.gmra.mxu1 %v791_v4 }
 0x550   :  { %v1392_v40 = vpop.f32.mrf.mxu1 }
 0x551   :  { %v889_v42 = vadd.f32 %v1392_v40, %v1065_v38 }
 0x552   :  { %v883_v43 = vpop.f32.mrf.mxu1 }
 0x553   :  { %v884_v44 = vadd.f32 %v1065_v38, %v883_v43  ;;  %v926_v45 = vsel %vm924_vm1, %v889_v42, -1e+30 }
 0x554   :  { %935 = vmax.xlane.f32.xlu0 %v926_v45 }
 0x555   :  { %v925_v41 = vsel %vm924_vm1, %v884_v44, -1e+30 }
 0x558   :  { %v1395_v46 = vpop.f32.mrf.mxu1  ;;  %933 = vmax.xlane.f32.xlu0 %v925_v41 }
 0x559   :  { %v899_v47 = vadd.f32 %v1395_v46, %v1065_v38 }
 0x55a   :  { %v893_v48 = vpop.f32.mrf.mxu1 }
 0x55b   :  { %v894_v39 = vadd.f32 %v1065_v38, %v893_v48  ;;  %v928_v49 = vsel %vm924_vm1, %v899_v47, -1e+30 }
 0x55c   :  { %939 = vmax.xlane.f32.xlu1 %v928_v49 }
 0x55d   :  { %v927_v51 = vsel %vm924_vm1, %v894_v39, -1e+30 }
 0x560   :  { %v1398_v53 = vpop.f32.mrf.mxu1  ;;  %937 = vmax.xlane.f32.xlu1 %v927_v51 }
 0x561   :  { %v909_v36 = vadd.f32 %v1398_v53, %v1065_v38 }
 0x562   :  { %v903_v54 = vpop.f32.mrf.mxu1 }
 0x563   :  { %v904_v55 = vadd.f32 %v1065_v38, %v903_v54  ;;  %v930_v57 = vsel %vm924_vm1, %v909_v36, -1e+30 }
 0x564   :  { %943 = vmax.xlane.f32.xlu1 %v930_v57 }
 0x565   :  { %v929_v59 = vsel %vm924_vm1, %v904_v55, -1e+30 }
 0x566   :  { %941 = vmax.xlane.f32.xlu0 %v929_v59 }
 0x568   :  { %v1401_v60 = vpop.f32.mrf.mxu1 }
 0x569   :  { %v919_v61 = vadd.f32 %v1401_v60, %v1065_v38 }
 0x56a   :  { %v913_v1 = vpop.f32.mrf.mxu1 }
 0x56b   :  { %v914_v2 = vadd.f32 %v1065_v38, %v913_v1  ;;  %v932_v5 = vsel %vm924_vm1, %v919_v61, -1e+30 }
 0x56c   :  { %947 = vmax.xlane.f32.xlu1 %v932_v5 }
 0x56d   :  { %v931_v6 = vsel %vm924_vm1, %v914_v2, -1e+30 }
 0x56e   :  { %945 = vmax.xlane.f32.xlu0 %v931_v6 }
 0x5dd   :  { %v936_v8 = vpop.xlane.xlu0 %935 }
 0x5de   :  { %v1798_v9 = vsub.f32 %v926_v45, %v936_v8 }
 0x5e0   :  { %v959_v10 = vmul.f32 1.442695, %v1798_v9 }
 0x5e1   :  { %v934_v7 = vpop.xlane.xlu0 %933 }
 0x5e2   :  { %1410 = vpow2.f32 %v959_v10  ;;  %v1801_v3 = vsub.f32 %v925_v41, %v934_v7 }
 0x5e4   :  { %v957_v63 = vmul.f32 1.442695, %v1801_v3 }
 0x5e5   :  { %v940_v11 = vpop.xlane.xlu1 %939 }
 0x5e6   :  { %1412 = vpow2.f32 %v957_v63  ;;  %v1804_v12 = vsub.f32 %v928_v49, %v940_v11 }
 0x5e8   :  { %v963_v13 = vmul.f32 1.442695, %v1804_v12 }
 0x5e9   :  { %v938_v14 = vpop.xlane.xlu1 %937 }
 0x5ea   :  { %1414 = vpow2.f32 %v963_v13  ;;  %v1807_v15 = vsub.f32 %v927_v51, %v938_v14 }
 0x5ec   :  { %v961_v16 = vmul.f32 1.442695, %v1807_v15 }
 0x5ed   :  { %v944_v17 = vpop.xlane.xlu1 %943 }
 0x5ee   :  { %1416 = vpow2.f32 %v961_v16  ;;  %v1810_v18 = vsub.f32 %v930_v57, %v944_v17 }
 0x5ef   :  { %v1411_v19 = vpop.eup %1410  ;;  %v942_v20 = vpop.xlane.xlu0 %941 }
 0x5f0   :  { %v967_v21 = vmul.f32 1.442695, %v1810_v18  ;;  %v1813_v22 = vsub.f32 %v929_v59, %v942_v20  ;;  %v974_v23 = vsel %vm924_vm1, %v1411_v19, 0.0 }
 0x5f1   :  { %983 = vadd.xlane.f32.xlu1 %v974_v23 }
 0x5f2   :  { %1418 = vpow2.f32 %v967_v21  ;;  %v965_v24 = vmul.f32 1.442695, %v1813_v22 }
 0x5f3   :  { %v1413_v50 = vpop.eup %1412 }
 0x5f4   :  { %1420 = vpow2.f32 %v965_v24  ;;  %v973_v25 = vsel %vm924_vm1, %v1413_v50, 0.0 }
 0x5f5   :  { %v948_v52 = vpop.xlane.xlu1 %947  ;;  %981 = vadd.xlane.f32.xlu0 %v973_v25 }
 0x5f6   :  { %v1820_v26 = vsub.f32 %v932_v5, %v948_v52 }
 0x5f7   :  { %v1415_v56 = vpop.eup %1414  ;;  %v946_v27 = vpop.xlane.xlu0 %945 }
 0x5f8   :  { %v971_v58 = vmul.f32 1.442695, %v1820_v26  ;;  %v1823_v28 = vsub.f32 %v931_v6, %v946_v27  ;;  %v976_v29 = vsel %vm924_vm1, %v1415_v56, 0.0 }
 0x5f9   :  { %987 = vadd.xlane.f32.xlu1 %v976_v29 }
 0x5fa   :  { %1422 = vpow2.f32 %v971_v58  ;;  %v969_v62 = vmul.f32 1.442695, %v1823_v28 }
 0x5fb   :  { %v1417_v30 = vpop.eup %1416 }
 0x5fc   :  { %1424 = vpow2.f32 %v969_v62  ;;  %v975_v0 = vsel %vm924_vm1, %v1417_v30, 0.0 }
 0x5fd   :  { %985 = vadd.xlane.f32.xlu0 %v975_v0 }
 0x5ff   :  { %v1419_v31 = vpop.eup %1418 }
 0x600   :  { %v978_v32 = vsel %vm924_vm1, %v1419_v31, 0.0 }
 0x601   :  { %v1421_v33 = vpop.eup %1420  ;;  %991 = vadd.xlane.f32.xlu1 %v978_v32 }
 0x602   :  { %v977_v34 = vsel %vm924_vm1, %v1421_v33, 0.0 }
 0x603   :  { %989 = vadd.xlane.f32.xlu0 %v977_v34 }
 0x607   :  { %v1423_v4 = vpop.eup %1422 }
 0x608   :  { %v980_v35 = vsel %vm924_vm1, %v1423_v4, 0.0 }
 0x609   :  { %v1425_v38 = vpop.eup %1424  ;;  %995 = vadd.xlane.f32.xlu1 %v980_v35 }
 0x60a   :  { %v979_v40 = vsel %vm924_vm1, %v1425_v38, 0.0 }
 0x60b   :  { %993 = vadd.xlane.f32.xlu0 %v979_v40 }
 0x67a   :  { %v984_v42 = vpop.xlane.xlu1 %983 }
 0x67b   :  { %1426 = vlog2.f32 %v984_v42 }
 0x67e   :  { %v982_v43 = vpop.xlane.xlu0 %981 }
 0x67f   :  { %1428 = vlog2.f32 %v982_v43 }
 0x682   :  { %v988_v44 = vpop.xlane.xlu1 %987 }
 0x683   :  { %1430 = vlog2.f32 %v988_v44 }
 0x686   :  { %v986_v45 = vpop.xlane.xlu0 %985 }
 0x687   :  { %1432 = vlog2.f32 %v986_v45 }
 0x688   :  { %v1427_v41 = vpop.eup %1426 }
 0x689   :  { %v1000_v46 = vmul.f32 0.6931472, %v1427_v41 }
 0x68a   :  { %v992_v47 = vpop.xlane.xlu1 %991 }
 0x68b   :  { %v1014_v48 = vsub.f32 %v1798_v9, %v1000_v46  ;;  %1434 = vlog2.f32 %v992_v47 }
 0x68c   :  { %v1429_v39 = vpop.eup %1428  ;;  %v990_v49 = vpop.xlane.xlu0 %989 }
 0x68d   :  { %v1022_v51 = vsel %vm924_vm1, %v1014_v48, 0.0  ;;  %v998_v53 = vmul.f32 0.6931472, %v1429_v39  ;;  %1436 = vlog2.f32 %v990_v49 }
 0x68e   :  { %1030 = vst [vmem:[%s1894_s8 + $0x8] sm:$0xff] %v1022_v51 }
 0x68f   :  { %v1013_v36 = vsub.f32 %v1801_v3, %v998_v53 }
 0x690   :  { %v1431_v54 = vpop.eup %1430 }
 0x691   :  { %v1021_v55 = vsel %vm924_vm1, %v1013_v36, 0.0  ;;  %v1004_v57 = vmul.f32 0.6931472, %v1431_v54 }
 0x692   :  { %1029 = vst [vmem:[%s1894_s8] sm:$0xff] %v1021_v55  ;;  %v996_v59 = vpop.xlane.xlu1 %995 }
 0x693   :  { %v1016_v60 = vsub.f32 %v1804_v12, %v1004_v57  ;;  %1438 = vlog2.f32 %v996_v59 }
 0x694   :  { %v1433_v61 = vpop.eup %1432  ;;  %v994_v1 = vpop.xlane.xlu0 %993 }
 0x695   :  { %v1024_v2 = vsel %vm924_vm1, %v1016_v60, 0.0  ;;  %v1002_v5 = vmul.f32 0.6931472, %v1433_v61  ;;  %1440 = vlog2.f32 %v994_v1 }
 0x696   :  { %1032 = vst [vmem:[%s1894_s8 + $0x18] sm:$0xff] %v1024_v2 }
 0x697   :  { %v1015_v6 = vsub.f32 %v1807_v15, %v1002_v5 }
 0x698   :  { %v1435_v8 = vpop.eup %1434 }
 0x699   :  { %v1023_v9 = vsel %vm924_vm1, %v1015_v6, 0.0  ;;  %v1008_v10 = vmul.f32 0.6931472, %v1435_v8 }
 0x69a   :  { %v1437_v7 = vpop.eup %1436  ;;  %1031 = vst [vmem:[%s1894_s8 + $0x10] sm:$0xff] %v1023_v9 }
 0x69b   :  { %v1018_v3 = vsub.f32 %v1810_v18, %v1008_v10  ;;  %v1006_v63 = vmul.f32 0.6931472, %v1437_v7 }
 0x69d   :  { %v1026_v11 = vsel %vm924_vm1, %v1018_v3, 0.0  ;;  %v1017_v12 = vsub.f32 %v1813_v22, %v1006_v63 }
 0x69e   :  { %1034 = vst [vmem:[%s1894_s8 + $0x28] sm:$0xff] %v1026_v11 }
 0x69f   :  { %v1025_v13 = vsel %vm924_vm1, %v1017_v12, 0.0 }
 0x6a0   :  { %v1439_v14 = vpop.eup %1438  ;;  %1033 = vst [vmem:[%s1894_s8 + $0x20] sm:$0xff] %v1025_v13 }
 0x6a1   :  { %v1012_v15 = vmul.f32 0.6931472, %v1439_v14 }
 0x6a2   :  { %v1441_v16 = vpop.eup %1440 }
 0x6a3   :  { %v1020_v17 = vsub.f32 %v1820_v26, %v1012_v15  ;;  %v1010_v18 = vmul.f32 0.6931472, %v1441_v16 }
 0x6a5   :  { %v1028_v19 = vsel %vm924_vm1, %v1020_v17, 0.0  ;;  %v1019_v20 = vsub.f32 %v1823_v28, %v1010_v18 }
 0x6a6   :  { %1036 = vst [vmem:[%s1894_s8 + $0x38] sm:$0xff] %v1028_v19 }
 0x6a7   :  { %v1027_v21 = vsel %vm924_vm1, %v1019_v20, 0.0 }
 0x6a8   :  { %1035 = vst [vmem:[%s1894_s8 + $0x30] sm:$0xff] %v1027_v21 }
 0x6a9   :  { %1041 = vsyncpa [#allocation3], 1 }
 0x6aa   :  { %1042 = vsyncpa [#allocation5], 1 }
 0x6ab   :  { %1043 = vsyncpa [#allocation8], 1 }
 0x6ac   :  { %1044 = vsyncpa [#allocation11], 1 }

</bundles_post_ra>
